<compile_context>
chip_gen: v6e
topology: v6e:2x2x1
jax: 0.10.0
libtpu: 0.0.40
codegen_flags: <defaults>
</compile_context>

<pallas_src>
import functools

import jax
import jax.numpy as jnp
from jax import lax
from jax.experimental import pallas as pl
from jax.experimental.pallas import tpu as pltpu

FC_PAD = 128  # fc_out columns padded to one full lane tile (lane-dense output store)


def _fused_kernel(num_layers, seq_len, lp, *refs):
    """All conv blocks -> AdaptiveMaxPool1d(1) -> fc1 -> ReLU -> fc_out, fully in VMEM."""
    x_ref = refs[0]
    conv_refs = refs[1:1 + 2 * num_layers]
    fc1_w_ref, fc1_b_ref, fc2_w_ref, fc2_b_ref = refs[1 + 2 * num_layers:
                                                      5 + 2 * num_layers]
    out_ref = refs[5 + 2 * num_layers]

    x = x_ref[...]                         # (B, LP, Cin) f32; rows >= seq_len are zero
    B = x.shape[0]

    L = seq_len                            # current logical (unpadded) length
    s = 1                                  # lattice stride: logical element l lives at row l*s
    for i in range(num_layers):            # static depth -> unrolled at trace time
        w_ref = conv_refs[2 * i]           # (3, Cin, Cout) bf16, BN scale folded into columns
        b_ref = conv_refs[2 * i + 1]       # (1, Cout) f32 folded conv+BN bias
        cin = x.shape[-1]
        cout = b_ref.shape[-1]

        # Conv1d(k=3, padding=1) on the dilated row lattice.  Neighbouring logical
        # elements sit +-s rows away; the padded rows hold genuine zeros (invariant
        # re-established below), so two XLU rolls provide the zero padding with no
        # concatenates and no boundary masks.
        x_prev = pltpu.roll(x, s, axis=1)        # row r <- row r-s   (left tap)
        x_next = pltpu.roll(x, lp - s, axis=1)   # row r <- row r+s   (right tap)

        def tap(v, t):
            # bf16 MXU operands, f32 accumulation (epilogue stays f32 for v5e).
            return jnp.dot(v.reshape(B * lp, cin).astype(jnp.bfloat16), w_ref[t],
                           preferred_element_type=jnp.float32)

        y = tap(x_prev, 0) + tap(x, 1) + tap(x_next, 2)            # (B*LP, Cout) f32
        y = jnp.maximum(y + b_ref[...], 0.0).reshape(B, lp, cout)  # folded BN bias + ReLU

        # Keep only lattice rows whose logical index survives the floor-mode
        # MaxPool (l < 2*(L//2)); zero everything else.  This drops the odd
        # trailing element and restores the zero-padding invariant the next
        # layer's rolls rely on.  (LP and s are powers of two -> bit tricks.)
        row = lax.broadcasted_iota(jnp.int32, (B, lp, cout), 1)
        keep = (row >> (s.bit_length() - 1)) < 2 * (L // 2)
        if s > 1:
            keep &= (row & (s - 1)) == 0
        y = jnp.where(keep, y, 0.0)

        # MaxPool1d(2, 2): pooled element k = max(rows 2k*s, (2k+1)*s), left in
        # place at row 2k*s, so the lattice stride doubles.  No scratch buffer,
        # no store/load round trip, no strided slice / compaction.
        x = jnp.maximum(y, pltpu.roll(y, lp - s, axis=1))
        L, s = L // 2, 2 * s

    # AdaptiveMaxPool1d(1): every stale / padded row is either 0 or a max of valid
    # post-ReLU (>= 0) values of the same batch element, so a plain max over the
    # padded length axis is exact.
    g = jnp.max(x, axis=1)                                             # (B, C_final) f32
    h = jnp.dot(g.astype(jnp.bfloat16), fc1_w_ref[...],
                preferred_element_type=jnp.float32) + fc1_b_ref[...]
    # TODO(synk): Dropout is the identity here (inference mode, no RNG mask).
    h = jnp.maximum(h, 0.0)
    out_ref[...] = (jnp.dot(h.astype(jnp.bfloat16), fc2_w_ref[...],
                            preferred_element_type=jnp.float32) + fc2_b_ref[...])


def _vmem_spec():
    return pl.BlockSpec(memory_space=pltpu.MemorySpace.VMEM)


@functools.partial(jax.jit, static_argnames=("num_classes",))
def swing_cnn_forward(params, x, *, num_classes):
    """x: (B, 27, D) — identical data to the permuted NCL tensor, channels-last."""
    B, L, _ = x.shape
    conv = params["conv"]
    num_layers = len(conv)

    # Guard: every MaxPool1d(2,2) needs length >= 2 (the PyTorch module would
    # itself degenerate past this depth).
    l_cur = L
    for _ in range(num_layers):
        assert l_cur >= 2, "num_layers too large for seq_len: MaxPool1d(2,2) output empty"
        l_cur //= 2

    # Host-side: zero-pad the length axis to a sublane-aligned power of two
    # (> L, so the trailing zero rows give the conv its padding inside the kernel).
    LP = max(8, pl.next_power_of_2(L + 1))
    xp = jnp.pad(x.astype(jnp.float32), ((0, 0), (0, LP - L), (0, 0)))

    flat_inputs = [xp]
    for blk in conv:
        flat_inputs += [blk["w"], blk["bias"]]
    flat_inputs += [params["fc1_w"], params["fc1_b"],
                    params["fc2_w"], params["fc2_b"]]

    # NOTE(v7x): at production batch sizes, add a leading batch grid axis with
    # compiler_params=pltpu.CompilerParams(dimension_semantics=("parallel",),
    # vmem_limit_bytes=...), give every weight/bias BlockSpec a constant index_map
    # so parameters stay VMEM-resident across grid steps, and size the batch block
    # so 2x double-buffered input block + weights + live activations fit the
    # 32 MiB scoped / 64 MiB physical VMEM (v5e/v6e tolerate ~2x larger blocks but
    # need vmem_limit_bytes raised above their 16/32 MiB scoped defaults).
    # At B=2 a single no-grid call is cheapest.
    out = pl.pallas_call(
        functools.partial(_fused_kernel, num_layers, L, LP),
        out_shape=jax.ShapeDtypeStruct((B, FC_PAD), jnp.float32),
        in_specs=[_vmem_spec() for _ in flat_inputs],
        out_specs=_vmem_spec(),
    )(*flat_inputs)
    return out[:, :num_classes]


def init_params(key, feature_dim, num_classes, num_layers):
    """Deterministic synthetic parameters matching the PyTorch module shapes,
    pre-folded for the kernel (eval-mode BatchNorm, bf16 MXU operands)."""
    eps = 1e-5
    params = {"conv": []}
    in_ch = feature_dim
    k = key
    for _ in range(num_layers):
        out_ch = in_ch * 2
        k, kw, kb = jax.random.split(k, 3)
        # torch Conv1d weight layout: (out_ch, in_ch, 3)
        w = 0.1 * jax.random.normal(kw, (out_ch, in_ch, 3), jnp.float32)
        b = 0.1 * jax.random.normal(kb, (out_ch,), jnp.float32)
        # BatchNorm1d defaults (eval): gamma=1, beta=0, running_mean=0, running_var=1
        gamma = jnp.ones((out_ch,), jnp.float32)
        beta = jnp.zeros((out_ch,), jnp.float32)
        rmean = jnp.zeros((out_ch,), jnp.float32)
        rvar = jnp.ones((out_ch,), jnp.float32)
        scale = gamma / jnp.sqrt(rvar + eps)
        bias = beta + (b - rmean) * scale
        # Per-tap weights (3, Cin, Cout) with the BN scale folded into the output
        # columns (drops the per-layer scale multiply and its input ref).
        w_taps = jnp.transpose(w, (2, 1, 0)) * scale[None, None, :]
        params["conv"].append(dict(
            w=w_taps.astype(jnp.bfloat16),
            bias=bias.reshape(1, out_ch),            # f32 epilogue
        ))
        in_ch = out_ch

    k, k1w, k1b, k2w, k2b = jax.random.split(k, 5)
    w1 = 0.1 * jax.random.normal(k1w, (128, in_ch), jnp.float32)   # torch Linear layout
    b1 = 0.1 * jax.random.normal(k1b, (128,), jnp.float32)
    w2 = 0.1 * jax.random.normal(k2w, (num_classes, 128), jnp.float32)
    b2 = 0.1 * jax.random.normal(k2b, (num_classes,), jnp.float32)
    # fc_out padded to 128 output columns for a lane-dense final store; the
    # wrapper slices back to num_classes.
    w2p = jnp.zeros((128, FC_PAD), jnp.float32).at[:, :num_classes].set(w2.T)
    b2p = jnp.zeros((1, FC_PAD), jnp.float32).at[:, :num_classes].set(b2[None, :])
    params["fc1_w"] = w1.T.astype(jnp.bfloat16)      # (in_ch, 128)
    params["fc1_b"] = b1.reshape(1, 128)
    params["fc2_w"] = w2p.astype(jnp.bfloat16)       # (128, 128)
    params["fc2_b"] = b2p
    return params


if __name__ == "__main__":
    B, SEQ, FEATURE_DIM, NUM_CLASSES, NUM_LAYERS = 2, 27, 4, 3, 2

    key = jax.random.PRNGKey(0)
    kx, kp = jax.random.split(key)
    x = jax.random.normal(kx, (B, SEQ, FEATURE_DIM), dtype=jnp.float32)
    params = init_params(kp, FEATURE_DIM, NUM_CLASSES, NUM_LAYERS)

    logits = swing_cnn_forward(params, x, num_classes=NUM_CLASSES)
    jax.block_until_ready(logits)

    assert logits.shape == (B, NUM_CLASSES), logits.shape
    assert logits.dtype == jnp.float32
    print("KERNEL_OK")
</pallas_src>

<mosaic_0001>
module attributes {stable_mosaic.version = 11 : i64} {
  func.func @_fused_kernel(%arg0: memref<2x32x4xf32, #tpu.memory_space<vmem>>, %arg1: memref<3x4x8xbf16, #tpu.memory_space<vmem>>, %arg2: memref<1x8xf32, #tpu.memory_space<vmem>>, %arg3: memref<3x8x16xbf16, #tpu.memory_space<vmem>>, %arg4: memref<1x16xf32, #tpu.memory_space<vmem>>, %arg5: memref<16x128xbf16, #tpu.memory_space<vmem>>, %arg6: memref<1x128xf32, #tpu.memory_space<vmem>>, %arg7: memref<128x128xbf16, #tpu.memory_space<vmem>>, %arg8: memref<1x128xf32, #tpu.memory_space<vmem>>, %arg9: memref<2x128xf32, #tpu.memory_space<vmem>>) attributes {dimension_semantics = [], scalar_prefetch = 0 : i64, scratch_operands = 0 : i64, tpu.core_type = #tpu.core_type<tc>} {
    %c0 = arith.constant 0 : index
    %c0_0 = arith.constant 0 : index
    %c0_1 = arith.constant 0 : index
    %0 = vector.load %arg0[%c0, %c0_0, %c0_1] : memref<2x32x4xf32, #tpu.memory_space<vmem>>, vector<2x32x4xf32>
    %c1_i32 = arith.constant 1 : i32
    %1 = tpu.dynamic_rotate %0 by %c1_i32 dim 1 : vector<2x32x4xf32>, i32 -> vector<2x32x4xf32>
    %c31_i32 = arith.constant 31 : i32
    %2 = tpu.dynamic_rotate %0 by %c31_i32 dim 1 : vector<2x32x4xf32>, i32 -> vector<2x32x4xf32>
    %3 = vector.shape_cast %1 : vector<2x32x4xf32> to vector<64x4xf32>
    %4 = arith.truncf %3 : vector<64x4xf32> to vector<64x4xbf16>
    %c0_2 = arith.constant 0 : index
    %c0_3 = arith.constant 0 : index
    %c0_4 = arith.constant 0 : index
    %5 = vector.load %arg1[%c0_2, %c0_3, %c0_4] : memref<3x4x8xbf16, #tpu.memory_space<vmem>>, vector<1x4x8xbf16>
    %6 = vector.shape_cast %5 : vector<1x4x8xbf16> to vector<4x8xbf16>
    %cst = arith.constant dense<0.000000e+00> : vector<64x8xf32>
    %7 = tpu.matmul %4, %6, %cst {dimension_numbers = #tpu.dot_dimension_numbers<[1], [0], [0], [1], [0, 0, 1, 1], [], []>} : vector<64x4xbf16>, vector<4x8xbf16>, vector<64x8xf32> -> vector<64x8xf32>
    %8 = vector.shape_cast %0 : vector<2x32x4xf32> to vector<64x4xf32>
    %9 = arith.truncf %8 : vector<64x4xf32> to vector<64x4xbf16>
    %c1 = arith.constant 1 : index
    %c0_5 = arith.constant 0 : index
    %c0_6 = arith.constant 0 : index
    %10 = vector.load %arg1[%c1, %c0_5, %c0_6] : memref<3x4x8xbf16, #tpu.memory_space<vmem>>, vector<1x4x8xbf16>
    %11 = vector.shape_cast %10 : vector<1x4x8xbf16> to vector<4x8xbf16>
    %cst_7 = arith.constant dense<0.000000e+00> : vector<64x8xf32>
    %12 = tpu.matmul %9, %11, %cst_7 {dimension_numbers = #tpu.dot_dimension_numbers<[1], [0], [0], [1], [0, 0, 1, 1], [], []>} : vector<64x4xbf16>, vector<4x8xbf16>, vector<64x8xf32> -> vector<64x8xf32>
    %13 = arith.addf %7, %12 : vector<64x8xf32>
    %14 = vector.shape_cast %2 : vector<2x32x4xf32> to vector<64x4xf32>
    %15 = arith.truncf %14 : vector<64x4xf32> to vector<64x4xbf16>
    %c2 = arith.constant 2 : index
    %c0_8 = arith.constant 0 : index
    %c0_9 = arith.constant 0 : index
    %16 = vector.load %arg1[%c2, %c0_8, %c0_9] : memref<3x4x8xbf16, #tpu.memory_space<vmem>>, vector<1x4x8xbf16>
    %17 = vector.shape_cast %16 : vector<1x4x8xbf16> to vector<4x8xbf16>
    %cst_10 = arith.constant dense<0.000000e+00> : vector<64x8xf32>
    %18 = tpu.matmul %15, %17, %cst_10 {dimension_numbers = #tpu.dot_dimension_numbers<[1], [0], [0], [1], [0, 0, 1, 1], [], []>} : vector<64x4xbf16>, vector<4x8xbf16>, vector<64x8xf32> -> vector<64x8xf32>
    %19 = arith.addf %13, %18 : vector<64x8xf32>
    %c0_11 = arith.constant 0 : index
    %c0_12 = arith.constant 0 : index
    %20 = vector.load %arg2[%c0_11, %c0_12] : memref<1x8xf32, #tpu.memory_space<vmem>>, vector<1x8xf32>
    %21 = vector.broadcast %20 : vector<1x8xf32> to vector<64x8xf32>
    %22 = arith.addf %19, %21 : vector<64x8xf32>
    %cst_13 = arith.constant 0.000000e+00 : f32
    %23 = vector.broadcast %cst_13 : f32 to vector<64x8xf32>
    %24 = arith.maximumf %22, %23 : vector<64x8xf32>
    %25 = vector.shape_cast %24 : vector<64x8xf32> to vector<2x32x8xf32>
    %26 = tpu.iota {dimensions = array<i32: 1>} : vector<2x32x8xi32>
    %c0_i32 = arith.constant 0 : i32
    %27 = vector.broadcast %c0_i32 : i32 to vector<2x32x8xi32>
    %28 = arith.shrsi %26, %27 : vector<2x32x8xi32>
    %c26_i32 = arith.constant 26 : i32
    %29 = vector.broadcast %c26_i32 : i32 to vector<2x32x8xi32>
    %30 = arith.cmpi slt, %28, %29 : vector<2x32x8xi32>
    %cst_14 = arith.constant 0.000000e+00 : f32
    %31 = vector.broadcast %cst_14 : f32 to vector<2x32x8xf32>
    %32 = arith.select %30, %25, %31 : vector<2x32x8xi1>, vector<2x32x8xf32>
    %c31_i32_15 = arith.constant 31 : i32
    %33 = tpu.dynamic_rotate %32 by %c31_i32_15 dim 1 : vector<2x32x8xf32>, i32 -> vector<2x32x8xf32>
    %34 = arith.maximumf %32, %33 : vector<2x32x8xf32>
    %c2_i32 = arith.constant 2 : i32
    %35 = tpu.dynamic_rotate %34 by %c2_i32 dim 1 : vector<2x32x8xf32>, i32 -> vector<2x32x8xf32>
    %c30_i32 = arith.constant 30 : i32
    %36 = tpu.dynamic_rotate %34 by %c30_i32 dim 1 : vector<2x32x8xf32>, i32 -> vector<2x32x8xf32>
    %37 = vector.shape_cast %35 : vector<2x32x8xf32> to vector<64x8xf32>
    %38 = arith.truncf %37 : vector<64x8xf32> to vector<64x8xbf16>
    %c0_16 = arith.constant 0 : index
    %c0_17 = arith.constant 0 : index
    %c0_18 = arith.constant 0 : index
    %39 = vector.load %arg3[%c0_16, %c0_17, %c0_18] : memref<3x8x16xbf16, #tpu.memory_space<vmem>>, vector<1x8x16xbf16>
    %40 = vector.shape_cast %39 : vector<1x8x16xbf16> to vector<8x16xbf16>
    %cst_19 = arith.constant dense<0.000000e+00> : vector<64x16xf32>
    %41 = tpu.matmul %38, %40, %cst_19 {dimension_numbers = #tpu.dot_dimension_numbers<[1], [0], [0], [1], [0, 0, 1, 1], [], []>} : vector<64x8xbf16>, vector<8x16xbf16>, vector<64x16xf32> -> vector<64x16xf32>
    %42 = vector.shape_cast %34 : vector<2x32x8xf32> to vector<64x8xf32>
    %43 = arith.truncf %42 : vector<64x8xf32> to vector<64x8xbf16>
    %c1_20 = arith.constant 1 : index
    %c0_21 = arith.constant 0 : index
    %c0_22 = arith.constant 0 : index
    %44 = vector.load %arg3[%c1_20, %c0_21, %c0_22] : memref<3x8x16xbf16, #tpu.memory_space<vmem>>, vector<1x8x16xbf16>
    %45 = vector.shape_cast %44 : vector<1x8x16xbf16> to vector<8x16xbf16>
    %cst_23 = arith.constant dense<0.000000e+00> : vector<64x16xf32>
    %46 = tpu.matmul %43, %45, %cst_23 {dimension_numbers = #tpu.dot_dimension_numbers<[1], [0], [0], [1], [0, 0, 1, 1], [], []>} : vector<64x8xbf16>, vector<8x16xbf16>, vector<64x16xf32> -> vector<64x16xf32>
    %47 = arith.addf %41, %46 : vector<64x16xf32>
    %48 = vector.shape_cast %36 : vector<2x32x8xf32> to vector<64x8xf32>
    %49 = arith.truncf %48 : vector<64x8xf32> to vector<64x8xbf16>
    %c2_24 = arith.constant 2 : index
    %c0_25 = arith.constant 0 : index
    %c0_26 = arith.constant 0 : index
    %50 = vector.load %arg3[%c2_24, %c0_25, %c0_26] : memref<3x8x16xbf16, #tpu.memory_space<vmem>>, vector<1x8x16xbf16>
    %51 = vector.shape_cast %50 : vector<1x8x16xbf16> to vector<8x16xbf16>
    %cst_27 = arith.constant dense<0.000000e+00> : vector<64x16xf32>
    %52 = tpu.matmul %49, %51, %cst_27 {dimension_numbers = #tpu.dot_dimension_numbers<[1], [0], [0], [1], [0, 0, 1, 1], [], []>} : vector<64x8xbf16>, vector<8x16xbf16>, vector<64x16xf32> -> vector<64x16xf32>
    %53 = arith.addf %47, %52 : vector<64x16xf32>
    %c0_28 = arith.constant 0 : index
    %c0_29 = arith.constant 0 : index
    %54 = vector.load %arg4[%c0_28, %c0_29] : memref<1x16xf32, #tpu.memory_space<vmem>>, vector<1x16xf32>
    %55 = vector.broadcast %54 : vector<1x16xf32> to vector<64x16xf32>
    %56 = arith.addf %53, %55 : vector<64x16xf32>
    %cst_30 = arith.constant 0.000000e+00 : f32
    %57 = vector.broadcast %cst_30 : f32 to vector<64x16xf32>
    %58 = arith.maximumf %56, %57 : vector<64x16xf32>
    %59 = vector.shape_cast %58 : vector<64x16xf32> to vector<2x32x16xf32>
    %60 = tpu.iota {dimensions = array<i32: 1>} : vector<2x32x16xi32>
    %c1_i32_31 = arith.constant 1 : i32
    %61 = vector.broadcast %c1_i32_31 : i32 to vector<2x32x16xi32>
    %62 = arith.shrsi %60, %61 : vector<2x32x16xi32>
    %c12_i32 = arith.constant 12 : i32
    %63 = vector.broadcast %c12_i32 : i32 to vector<2x32x16xi32>
    %64 = arith.cmpi slt, %62, %63 : vector<2x32x16xi32>
    %c1_i32_32 = arith.constant 1 : i32
    %65 = vector.broadcast %c1_i32_32 : i32 to vector<2x32x16xi32>
    %66 = arith.andi %60, %65 : vector<2x32x16xi32>
    %c0_i32_33 = arith.constant 0 : i32
    %67 = vector.broadcast %c0_i32_33 : i32 to vector<2x32x16xi32>
    %68 = arith.cmpi eq, %66, %67 : vector<2x32x16xi32>
    %69 = arith.andi %64, %68 : vector<2x32x16xi1>
    %cst_34 = arith.constant 0.000000e+00 : f32
    %70 = vector.broadcast %cst_34 : f32 to vector<2x32x16xf32>
    %71 = arith.select %69, %59, %70 : vector<2x32x16xi1>, vector<2x32x16xf32>
    %c30_i32_35 = arith.constant 30 : i32
    %72 = tpu.dynamic_rotate %71 by %c30_i32_35 dim 1 : vector<2x32x16xf32>, i32 -> vector<2x32x16xf32>
    %73 = arith.maximumf %71, %72 : vector<2x32x16xf32>
    %cst_36 = arith.constant dense<0xFF800000> : vector<2x16xf32>
    %74 = vector.multi_reduction <maximumf>, %73, %cst_36 [1] : vector<2x32x16xf32> to vector<2x16xf32>
    %75 = arith.truncf %74 : vector<2x16xf32> to vector<2x16xbf16>
    %c0_37 = arith.constant 0 : index
    %c0_38 = arith.constant 0 : index
    %76 = vector.load %arg5[%c0_37, %c0_38] : memref<16x128xbf16, #tpu.memory_space<vmem>>, vector<16x128xbf16>
    %cst_39 = arith.constant dense<0.000000e+00> : vector<2x128xf32>
    %77 = tpu.matmul %75, %76, %cst_39 {dimension_numbers = #tpu.dot_dimension_numbers<[1], [0], [0], [1], [0, 0, 1, 1], [], []>} : vector<2x16xbf16>, vector<16x128xbf16>, vector<2x128xf32> -> vector<2x128xf32>
    %c0_40 = arith.constant 0 : index
    %c0_41 = arith.constant 0 : index
    %78 = vector.load %arg6[%c0_40, %c0_41] : memref<1x128xf32, #tpu.memory_space<vmem>>, vector<1x128xf32>
    %79 = vector.broadcast %78 : vector<1x128xf32> to vector<2x128xf32>
    %80 = arith.addf %77, %79 : vector<2x128xf32>
    %cst_42 = arith.constant 0.000000e+00 : f32
    %81 = vector.broadcast %cst_42 : f32 to vector<2x128xf32>
    %82 = arith.maximumf %80, %81 : vector<2x128xf32>
    %83 = arith.truncf %82 : vector<2x128xf32> to vector<2x128xbf16>
    %c0_43 = arith.constant 0 : index
    %c0_44 = arith.constant 0 : index
    %84 = vector.load %arg7[%c0_43, %c0_44] : memref<128x128xbf16, #tpu.memory_space<vmem>>, vector<128x128xbf16>
    %cst_45 = arith.constant dense<0.000000e+00> : vector<2x128xf32>
    %85 = tpu.matmul %83, %84, %cst_45 {dimension_numbers = #tpu.dot_dimension_numbers<[1], [0], [0], [1], [0, 0, 1, 1], [], []>} : vector<2x128xbf16>, vector<128x128xbf16>, vector<2x128xf32> -> vector<2x128xf32>
    %c0_46 = arith.constant 0 : index
    %c0_47 = arith.constant 0 : index
    %86 = vector.load %arg8[%c0_46, %c0_47] : memref<1x128xf32, #tpu.memory_space<vmem>>, vector<1x128xf32>
    %87 = vector.broadcast %86 : vector<1x128xf32> to vector<2x128xf32>
    %88 = arith.addf %85, %87 : vector<2x128xf32>
    %c0_48 = arith.constant 0 : index
    %c0_49 = arith.constant 0 : index
    %89 = vector.load %arg9[%c0_48, %c0_49] : memref<2x128xf32, #tpu.memory_space<vmem>>, vector<2x128xf32>
    tpu.vector_store %arg9[%c0_48, %c0_49], %88 {strides = array<i32>} : memref<2x128xf32, #tpu.memory_space<vmem>>, vector<2x128xf32>,
    return
  }
}

</mosaic_0001>

<bundles_post_ra>
// kernel: swing_cnn_forward.1
= control target key start
LH: loop header
LB: loop body
LE: loop exit
PB: predicated region body
PF: predicated region fallthrough
CT: control target
= control target key end

     0   :  { %vm102_vm0 = vcmask 1041408   ;;  %v50_v3 = vlaneseq  ;;  %vm89_vm1 = vcmask 31744   ;;  %s1675_s0 = inlined_call_operand.vmem [shape: f32[2,32,4], index: 0, kind: input, shape index: {}]   ;;  %s1676_s1 = inlined_call_operand.vmem [shape: bf16[3,4,8], index: 1, kind: input, shape index: {}]   ;;  %s1677_s2 = inlined_call_operand.vmem [shape: f32[1,8], index: 2, kind: input, shape index: {}]   ;;  %s1678_s3 = inlined_call_operand.vmem [shape: bf16[3,8,16], index: 3, kind: input, shape index: {}]   ;;  %s1679_s4 = inlined_call_operand.vmem [shape: f32[1,16], index: 4, kind: input, shape index: {}]   ;;  %s1680_s5 = inlined_call_operand.vmem [shape: bf16[16,128], index: 5, kind: input, shape index: {}]   ;;  %s1681_s6 = inlined_call_operand.vmem [shape: f32[1,128], index: 6, kind: input, shape index: {}]   ;;  %s1682_s7 = inlined_call_operand.vmem [shape: bf16[128,128], index: 7, kind: input, shape index: {}]   ;;  %s1683_s8 = inlined_call_operand.vmem [shape: f32[1,128], index: 8, kind: input, shape index: {}]   ;;  %s1684_s9 = inlined_call_operand.hbm [shape: f32[2,128], index: 9, kind: output, shape index: {}]  }
   0x1   :  { %v1005_v0 = vld [vmem:[%s1676_s1 + $0x2] sm:$0x3]  ;;  %v35_v2 = vld [vmem:[%s1675_s0 + $0x8] sm:$0xff]  ;;  %v1286_v5 = vld [vmem:[%s1675_s0 + $0x10] sm:$0xff] }
   0x2   :  { %v1276_v1 = vld [vmem:[%s1675_s0] sm:$0xff]  ;;  %1176 = vmatprep.subr.msk.bf16.mxu0 %vm102_vm0, %v1005_v0  ;;  %v104_v4 = vsel %vm102_vm0, %v1005_v0, 0  ;;  %v1291_v6 = vld [vmem:[%s1675_s0 + $0x18] sm:$0xff]  ;;  %v1303_v11 = vshrl.u32 %v50_v3, 7  ;;  %v39_v13 = vld [vmem:[%s1675_s0 + $0x28] sm:$0xff]  ;;  %v44_v16 = vrot.slane %v35_v2, 7 }
   0x3   :  { %1089 = vmatpush3.bf16.msra.mxu0 %v104_v4  ;;  %v83_v7 = vpack.c.bf16 %v35_v2, %v1276_v1  ;;  %v82_v8 = vld [vmem:[%s1676_s1] sm:$0x3]  ;;  %v42_v10 = vrot.slane %v1276_v1, 7  ;;  %v84_v12 = vpack.c.bf16 %v1291_v6, %v1286_v5  ;;  %v1315_v14 = vld [vmem:[%s1675_s0 + $0x38] sm:$0xff]  ;;  %v40_v15 = vld [vmem:[%s1675_s0 + $0x30] sm:$0xff]  ;;  %v48_v17 = vrot.slane %v1291_v6, 7 }
   0x4   :  { %v1300_v9 = vld [vmem:[%s1675_s0 + $0x20] sm:$0xff]  ;;  %1177 = vmatprep.subr.msk.bf16.mxu0 %vm102_vm0, %v82_v8  ;;  %1178 = vmatprep.subr.msk.bf16.mxu1 %vm102_vm0, %v82_v8  ;;  %v184_v18 = vsel %vm102_vm0, %v82_v8, 0  ;;  %vm52_vm2 = vcmp.lt.s32.totalorder %v1303_v11, 1  ;;  %v45_v22 = vrot.slane %v39_v13, 7  ;;  %v49_v23 = vrot.slane %v1315_v14, 7 }
   0x5   :  { %1090 = vmatprep.mubr.msk.bf16.mxu0 %vm89_vm1, %v83_v7  ;;  %v85_v19 = vpack.c.bf16 %v39_v13, %v1300_v9  ;;  %v1014_v20 = vld [vmem:[%s1676_s1 + $0x4] sm:$0x3]  ;;  %1175 = vmatpush3.bf16.msra.mxu1 %v184_v18  ;;  %v43_v21 = vrot.slane %v1300_v9, 7  ;;  %v47_v24 = vrot.slane %v40_v15, 7  ;;  %v61_v25 = vrot.slane %v1276_v1, 1 }
   0x6   :  { %1091 = vmatmul.mubr.msk.bf16.vlgmr.msra.gmra.mxu0 %vm89_vm1, %v84_v12  ;;  %v63_v26 = vrot.slane %v35_v2, 1  ;;  %v57_v32 = vsel %vm52_vm2, %v42_v10, %v44_v16  ;;  %v46_v33 = vrot.slane %v1286_v5, 7  ;;  %v86_v34 = vpack.c.bf16 %v1315_v14, %v40_v15 }
   0x7   :  { %1099 = vmatpush3.bf16.msra.mxu0 %v184_v18  ;;  %1094 = vmatprep.mubr.msk.bf16.mxu0 %vm89_vm1, %v85_v19  ;;  %v58_v27 = vsel %vm52_vm2, %v43_v21, %v45_v22  ;;  %v60_v28 = vsel %vm52_vm2, %v49_v23, %v43_v21  ;;  %v54_v30 = vsel %vm52_vm2, %v47_v24, %v49_v23  ;;  %v65_v37 = vrot.slane %v1286_v5, 1 }
   0x8   :  { %1179 = vmatprep.subr.msk.bf16.mxu0 %vm102_vm0, %v1014_v20  ;;  %v80_v29 = vpack.c.bf16 %v58_v27, %v60_v28  ;;  %v56_v31 = vsel %vm52_vm2, %v45_v22, %v47_v24  ;;  %v59_v36 = vsel %vm52_vm2, %v48_v17, %v42_v10  ;;  %vm69_vm3 = vcmp.lt.s32.totalorder %v1303_v11, 7 }
   0x9   :  { %v81_v35 = vpack.c.bf16 %v54_v30, %v56_v31  ;;  %v78_v38 = vpack.c.bf16 %v57_v32, %v59_v36 }
   0xa   :  { %1104 = vmatprep.mubr.msk.bf16.mxu1 %vm89_vm1, %v80_v29 }
   0xb   :  { %1105 = vmatmul.mubr.msk.bf16.vlgmr.msra.gmra.mxu1 %vm89_vm1, %v81_v35 }
   0xe   :  { %1095 = vmatmul.mubr.msk.bf16.gmra.mxu0 %vm89_vm1, %v86_v34 }
   0xf   :  { %14 = vsyncpa [#allocation3], 0  ;;  %v53_v39 = vsel %vm52_vm2, %v46_v33, %v48_v17  ;;  %v55_v40 = vsel %vm52_vm2, %v44_v16, %v46_v33  ;;  %1100 = vmatprep.mubr.msk.bf16.mxu0 %vm89_vm1, %v78_v38  ;;  %v72_v41 = vsel %vm69_vm3, %v63_v26, %v65_v37  ;;  %v74_v42 = vsel %vm69_vm3, %v61_v25, %v63_v26  ;;  %v1020_v60 = vld [vmem:[%s1678_s3 + $0x4] sm:$0xf]  ;;  %v445_v62 = vld [vmem:[%s1678_s3] sm:$0xf] }
  0x10   :  { %v79_v43 = vpack.c.bf16 %v53_v39, %v55_v40  ;;  %v67_v44 = vrot.slane %v1291_v6, 1  ;;  %v251_v45 = vpack.c.bf16 %v72_v41, %v74_v42  ;;  %v62_v46 = vrot.slane %v1300_v9, 1  ;;  %v1029_v0 = vld [vmem:[%s1678_s3 + $0x8] sm:$0xf]  ;;  %s1219_s13 = smov [#allocation2]  }
  0x11   :  { %v64_v47 = vrot.slane %v39_v13, 1  ;;  %v66_v48 = vrot.slane %v40_v15, 1  ;;  %v270_v49 = vsel %vm102_vm0, %v1014_v20, 0  ;;  %v68_v55 = vrot.slane %v1315_v14, 1  ;;  %v1397_v20 = vld [vmem:[%s1677_s2] ss:$0 sm:$0xff] }
  0x12   :  { %v70_v50 = vsel %vm69_vm3, %v65_v37, %v67_v44  ;;  %v76_v51 = vsel %vm69_vm3, %v67_v44, %v61_v25  ;;  %vm465_vm4 = vcmask 1043456   ;;  %v1401_v26 = vadd.s32 24, %v1303_v11  ;;  %s997_s3 = sshll.u32 %s1219_s13, 4  ;;  %s998_s3 = int_to_ptr.vmem [resolvable:$true] %s997_s3 }
  0x13   :  { %v73_v52 = vsel %vm69_vm3, %v64_v47, %v66_v48  ;;  %v75_v53 = vsel %vm69_vm3, %v62_v46, %v64_v47  ;;  %v252_v54 = vpack.c.bf16 %v76_v51, %v70_v50  ;;  %v71_v57 = vsel %vm69_vm3, %v66_v48, %v68_v55  ;;  %1180 = vmatprep.subr.msk.bf16.mxu1 %vm465_vm4, %v1020_v60  ;;  %p1200_p1 = scmp.lt.s32.totalorder %s998_s3, %s998_s3 }
  0x14   :  { %v253_v56 = vpack.c.bf16 %v73_v52, %v75_v53  ;;  %v77_v58 = vsel %vm69_vm3, %v68_v55, %v62_v46  ;;  %v467_v61 = vsel %vm465_vm4, %v1020_v60, 0  ;;  %v547_v63 = vsel %vm465_vm4, %v445_v62, 0 }
  0x15   :  { %v254_v59 = vpack.c.bf16 %v77_v58, %v71_v57  ;;  %1119 = vmatpush3.bf16.msra.mxu1 %v467_v61  ;;  %v1392_v1 = vsel %vm465_vm4, %v1029_v0, 0  ;;  %vm374_vm5 = vcmp.lt.s32.totalorder %v1401_v26, 26  ;;  %vm415_vm6 = vcmp.lt.s32.totalorder %v1303_v11, 2 }
  0x16   :  { %1101 = vmatmul.mubr.msk.bf16.vlgmr.msra.gmra.mxu0 %vm89_vm1, %v79_v43  ;;  %1182 = vmatprep.subr.msk.bf16.mxu1 %vm465_vm4, %v1029_v0  ;;  %vm452_vm7 = vcmask 64512   ;;  %vm432_vm8 = vcmp.lt.s32.totalorder %v1303_v11, 6  ;;  %vm1218_vm9 = vmmov 0  }
  0x17   :  { %1109 = vmatpush3.bf16.msra.mxu0 %v270_v49  ;;  %1110 = vmatprep.mubr.msk.bf16.mxu0 %vm89_vm1, %v251_v45 }
  0x18   :  { %1181 = vmatprep.subr.msk.bf16.mxu0 %vm465_vm4, %v445_v62 }
  0x1e   :  { %1111 = vmatmul.mubr.msk.bf16.vlgmr.msra.gmra.mxu0 %vm89_vm1, %v252_v54 }
  0x1f   :  { %1114 = vmatprep.mubr.msk.bf16.mxu0 %vm89_vm1, %v253_v56  ;;  %1129 = vmatpush3.bf16.msra.mxu0 %v547_v63 }
  0x26   :  { %1115 = vmatmul.mubr.msk.bf16.gmra.mxu0 %vm89_vm1, %v254_v59 }
  0xc6   :  { %v1092_v2 = vpop.f32.mrf.mxu0 }
  0xc8   :  { %v140_v3 = vpop.f32.mrf.mxu0 }
  0xca   :  { %v1093_v4 = vpop.f32.mrf.mxu0 }
  0xcb   :  { %v1106_v17 = vpop.f32.mrf.mxu1 }
  0xcc   :  { %v143_v5 = vpop.f32.mrf.mxu0 }
  0xcd   :  { %v236_v27 = vpop.f32.mrf.mxu1 }
  0xce   :  { %v1096_v6 = vpop.f32.mrf.mxu0 }
  0xcf   :  { %v245_v32 = vadd.f32 %v1106_v17, %v1096_v6  ;;  %v1107_v39 = vpop.f32.mrf.mxu1 }
  0xd0   :  { %v156_v7 = vpop.f32.mrf.mxu0 }
  0xd1   :  { %v237_v38 = vadd.f32 %v236_v27, %v156_v7  ;;  %v239_v54 = vpop.f32.mrf.mxu1 }
  0xd2   :  { %v1097_v8 = vpop.f32.mrf.mxu0 }
  0xd3   :  { %v248_v47 = vadd.f32 %v1107_v39, %v1097_v8 }
  0xd4   :  { %v159_v9 = vpop.f32.mrf.mxu0 }
  0xd6   :  { %v1102_v10 = vpop.f32.mrf.mxu0 }
  0xd7   :  { %v229_v15 = vadd.f32 %v1102_v10, %v1092_v2 }
  0xd8   :  { %v220_v12 = vpop.f32.mrf.mxu0 }
  0xd9   :  { %v221_v18 = vadd.f32 %v220_v12, %v140_v3  ;;  %v240_v3 = vadd.f32 %v239_v54, %v159_v9 }
  0xda   :  { %v1103_v13 = vpop.f32.mrf.mxu0 }
  0xdb   :  { %v232_v22 = vadd.f32 %v1103_v13, %v1093_v4 }
  0xdc   :  { %v223_v14 = vpop.f32.mrf.mxu0 }
  0xdd   :  { %v224_v28 = vadd.f32 %v223_v14, %v143_v5 }
  0xde   :  { %v1112_v16 = vpop.f32.mrf.mxu0 }
  0xdf   :  { %v339_v19 = vadd.f32 %v1112_v16, %v229_v15 }
  0xe0   :  { %v306_v21 = vpop.f32.mrf.mxu0 }
  0xe1   :  { %v337_v23 = vadd.f32 %v306_v21, %v221_v18  ;;  %v354_v24 = vadd.f32 %v1397_v20, %v339_v19 }
  0xe2   :  { %v1113_v25 = vpop.f32.mrf.mxu0 }
  0xe3   :  { %v352_v29 = vadd.f32 %v1397_v20, %v337_v23  ;;  %v340_v30 = vadd.f32 %v1113_v25, %v232_v22  ;;  %v362_v35 = vmax.f32 %v354_v24, 0.0 }
  0xe4   :  { %v309_v31 = vpop.f32.mrf.mxu0 }
  0xe5   :  { %v355_v33 = vadd.f32 %v1397_v20, %v340_v30  ;;  %v338_v34 = vadd.f32 %v309_v31, %v224_v28  ;;  %v360_v36 = vmax.f32 %v352_v29, 0.0  ;;  %v387_v48 = vrot.slane %v362_v35, 1 }
  0xe6   :  { %v1116_v37 = vpop.f32.mrf.mxu0 }
  0xe7   :  { %v363_v40 = vmax.f32 %v355_v33, 0.0  ;;  %v353_v41 = vadd.f32 %v1397_v20, %v338_v34  ;;  %v343_v42 = vadd.f32 %v1116_v37, %v245_v32  ;;  %v383_v49 = vrot.slane %v360_v36, 1 }
  0xe8   :  { %v322_v43 = vpop.f32.mrf.mxu0 }
  0xe9   :  { %v378_v44 = vsel %vm374_vm5, %v363_v40, 0.0  ;;  %v361_v45 = vmax.f32 %v353_v41, 0.0  ;;  %v341_v46 = vadd.f32 %v322_v43, %v237_v38  ;;  %v358_v53 = vadd.f32 %v1397_v20, %v343_v42 }
  0xea   :  { %v389_v50 = vrot.slane %v378_v44, 1  ;;  %v1117_v51 = vpop.f32.mrf.mxu0 }
  0xeb   :  { %v385_v52 = vrot.slane %v361_v45, 1  ;;  %v356_v57 = vadd.f32 %v1397_v20, %v341_v46  ;;  %v344_v58 = vadd.f32 %v1117_v51, %v248_v47  ;;  %v366_v7 = vmax.f32 %v358_v53, 0.0 }
  0xec   :  { %v391_v55 = vsel %vm69_vm3, %v387_v48, %v389_v50  ;;  %v397_v56 = vsel %vm69_vm3, %v389_v50, %v383_v49  ;;  %v325_v2 = vpop.f32.mrf.mxu0 }
  0xed   :  { %v1415_v59 = vmax.f32 %v362_v35, %v391_v55  ;;  %v1417_v60 = vmax.f32 %v378_v44, %v397_v56  ;;  %v393_v61 = vsel %vm69_vm3, %v385_v52, %v387_v48  ;;  %v395_v62 = vsel %vm69_vm3, %v383_v49, %v385_v52 }
  0xee   :  { %v1424_v63 = vmax.f32 %v360_v36, %v395_v62  ;;  %v400_v0 = vmax.f32 %v361_v45, %v393_v61  ;;  %v364_v8 = vmax.f32 %v356_v57, 0.0  ;;  %v359_v10 = vadd.f32 %v1397_v20, %v344_v58 }
  0xef   :  { %v411_v4 = vrot.slane %v1415_v59, 6  ;;  %v413_v5 = vrot.slane %v1417_v60, 6  ;;  %v342_v13 = vadd.f32 %v325_v2, %v240_v3  ;;  %v447_v9 = vpack.c.bf16 %v1417_v60, %v1415_v59 }
  0xf0   :  { %v409_v6 = vrot.slane %v400_v0, 6  ;;  %v446_v14 = vpack.c.bf16 %v400_v0, %v1424_v63  ;;  %v407_v15 = vrot.slane %v1424_v63, 6  ;;  %v367_v17 = vmax.f32 %v359_v10, 0.0  ;;  %v1188_v10 = vld [vmem:[%s1682_s7 + $0x30] sm:$0xff]  }
  0xf1   :  { %v416_v12 = vsel %vm415_vm6, %v411_v4, %v413_v5  ;;  %v357_v19 = vadd.f32 %v1397_v20, %v342_v13  ;;  %v426_v23 = vrot.slane %v400_v0, 2  ;;  %v388_v24 = vrot.slane %v366_v7, 1  ;;  %v1190_v13 = vld [vmem:[%s1682_s7 + $0x20] sm:$0xff]  }
  0xf2   :  { %v418_v16 = vsel %vm415_vm6, %v409_v6, %v411_v4  ;;  %1120 = vmatprep.mubr.msk.bf16.mxu1 %vm452_vm7, %v446_v14  ;;  %v420_v21 = vsel %vm415_vm6, %v407_v15, %v409_v6  ;;  %v422_v22 = vsel %vm415_vm6, %v413_v5, %v407_v15  ;;  %v382_v25 = vsel %vm374_vm5, %v367_v17, 0.0  ;;  %v1186_v6 = vld [vmem:[%s1680_s5] sm:$0xff]   ;;  %v1191_v14 = vld [vmem:[%s1682_s7 + $0x18] sm:$0xff]   ;;  %v1192_v15 = vld [vmem:[%s1682_s7 + $0x10] sm:$0xff]  }
  0xf3   :  { %v442_v18 = vpack.c.bf16 %v416_v12, %v418_v16  ;;  %1121 = vmatmul.mubr.msk.bf16.vlgmr.msra.gmra.mxu1 %vm452_vm7, %v447_v9  ;;  %v441_v27 = vpack.c.bf16 %v420_v21, %v422_v22  ;;  %v384_v28 = vrot.slane %v364_v8, 1  ;;  %v390_v29 = vrot.slane %v382_v25, 1  ;;  %v1189_v12 = vld [vmem:[%s1682_s7 + $0x28] sm:$0xff]  }
  0xf4   :  { %v365_v30 = vmax.f32 %v357_v19, 0.0  ;;  %1139 = vmatpush3.bf16.msra.mxu1 %v1392_v1  ;;  %v428_v20 = vrot.slane %v1415_v59, 2  ;;  %v424_v31 = vrot.slane %v1424_v63, 2  ;;  %v430_v47 = vrot.slane %v1417_v60, 2 }
  0xf5   :  { %1130 = vmatprep.mubr.msk.bf16.mxu0 %vm452_vm7, %v441_v27  ;;  %v392_v32 = vsel %vm69_vm3, %v388_v24, %v390_v29  ;;  %v398_v33 = vsel %vm69_vm3, %v390_v29, %v384_v28 }
  0xf6   :  { %v386_v34 = vrot.slane %v365_v30, 1  ;;  %1131 = vmatmul.mubr.msk.bf16.vlgmr.msra.gmra.mxu0 %vm452_vm7, %v442_v18  ;;  %v405_v35 = vmax.f32 %v366_v7, %v392_v32  ;;  %v406_v36 = vmax.f32 %v382_v25, %v398_v33  ;;  %v435_v38 = vsel %vm432_vm8, %v426_v23, %v428_v20 }
  0xf7   :  { %v437_v42 = vsel %vm432_vm8, %v424_v31, %v426_v23  ;;  %v433_v59 = vsel %vm432_vm8, %v428_v20, %v430_v47  ;;  %v439_v60 = vsel %vm432_vm8, %v430_v47, %v424_v31  ;;  %v1217_v7 = vmov 0.0  }
  0xf8   :  { %v394_v1 = vsel %vm69_vm3, %v386_v34, %v388_v24  ;;  %v396_v37 = vsel %vm69_vm3, %v384_v28, %v386_v34  ;;  %v414_v39 = vrot.slane %v406_v36, 6  ;;  %v412_v43 = vrot.slane %v405_v35, 6  ;;  %1148 = vmatprep.subr.bf16.mxu0 %v1217_v7  ;;  %1154 = vmatprep.subr.bf16.mxu1 %v1217_v7 }
  0xf9   :  { %v403_v40 = vmax.f32 %v364_v8, %v396_v37  ;;  %v404_v41 = vmax.f32 %v365_v30, %v394_v1  ;;  %v449_v48 = vpack.c.bf16 %v406_v36, %v405_v35  ;;  %v614_v49 = vpack.c.bf16 %v435_v38, %v437_v42  ;;  %1149 = vmatpush3.bf16.msra.mxu0 %v1186_v6  ;;  %v1187_v8 = vld [vmem:[%s1682_s7 + $0x38] sm:$0xff]   ;;  %v1533_v1 = vld [vmem:[%s1679_s4] ss:$0 sm:$0xff] }
  0xfa   :  { %v417_v50 = vsel %vm415_vm6, %v412_v43, %v414_v39  ;;  %v429_v54 = vrot.slane %v405_v35, 2  ;;  %v615_v63 = vpack.c.bf16 %v439_v60, %v433_v59  ;;  %v431_v0 = vrot.slane %v406_v36, 2 }
  0xfb   :  { %v410_v44 = vrot.slane %v404_v41, 6  ;;  %v448_v45 = vpack.c.bf16 %v404_v41, %v403_v40  ;;  %v408_v46 = vrot.slane %v403_v40, 6  ;;  %v427_v55 = vrot.slane %v404_v41, 2 }
  0xfc   :  { %v425_v58 = vrot.slane %v403_v40, 2  ;;  %v434_v3 = vsel %vm432_vm8, %v429_v54, %v431_v0  ;;  %v369_v24 = vadd.s32 16, %v1303_v11  ;;  %v731_v31 = vshra.s32 %v1303_v11, 1 }
  0xfd   :  { %1124 = vmatprep.mubr.msk.bf16.mxu1 %vm452_vm7, %v448_v45  ;;  %v421_v51 = vsel %vm415_vm6, %v408_v46, %v410_v44  ;;  %v423_v52 = vsel %vm415_vm6, %v414_v39, %v408_v46  ;;  %v419_v53 = vsel %vm415_vm6, %v410_v44, %v412_v43  ;;  %v436_v61 = vsel %vm432_vm8, %v427_v55, %v429_v54 }
  0xfe   :  { %1125 = vmatmul.mubr.msk.bf16.gmra.mxu1 %vm452_vm7, %v449_v48  ;;  %v443_v56 = vpack.c.bf16 %v421_v51, %v423_v52  ;;  %v444_v57 = vpack.c.bf16 %v417_v50, %v419_v53  ;;  %v438_v62 = vsel %vm432_vm8, %v425_v58, %v427_v55  ;;  %v440_v4 = vsel %vm432_vm8, %v431_v0, %v425_v58 }
  0xff   :  { %1140 = vmatprep.mubr.msk.bf16.mxu1 %vm452_vm7, %v614_v49  ;;  %v616_v2 = vpack.c.bf16 %v436_v61, %v438_v62  ;;  %v617_v5 = vpack.c.bf16 %v440_v4, %v434_v3  ;;  %v733_v29 = vshra.s32 %v369_v24, 1  ;;  %v741_v20 = vand.u32 1, %v369_v24 }
 0x100   :  { %1134 = vmatprep.mubr.msk.bf16.mxu0 %vm452_vm7, %v443_v56  ;;  %v368_v32 = vadd.s32 8, %v1303_v11  ;;  %v739_v35 = vand.u32 1, %v1303_v11  ;;  %v734_v37 = vshra.s32 %v1401_v26, 1  ;;  %v742_v38 = vand.u32 1, %v1401_v26 }
 0x101   :  { %1135 = vmatmul.mubr.msk.bf16.gmra.mxu0 %vm452_vm7, %v444_v57  ;;  %vm1537_vm10 = vcmp.lt.s32.totalorder %v733_v29, 12  ;;  %vm1541_vm11 = vcmp.eq.s32.totalorder %v741_v20, 0  ;;  %vm1545_vm12 = vcmp.lt.s32.totalorder %v731_v31, 12  ;;  %vm783_vm6 = vcmask 130048  }
 0x102   :  { %1150 = vmatprep.mubr.msk.bf16.mxu0 %vm1218_vm9, %v1217_v7  ;;  %v732_v45 = vshra.s32 %v368_v32, 1  ;;  %v740_v46 = vand.u32 1, %v368_v32  ;;  %vm1550_vm13 = vcmp.eq.s32.totalorder %v739_v35, 0  ;;  %vm1554_vm14 = vcmp.lt.s32.totalorder %v734_v37, 12  ;;  %vm749_vm0 = vmand %vm1537_vm10, %vm1541_vm11 }
 0x103   :  { %vm1558_vm15 = vcmp.eq.s32.totalorder %v742_v38, 0  ;;  %vm747_vm1 = vmand %vm1545_vm12, %vm1550_vm13 }
 0x104   :  { %vm1571_vm2 = vcmp.lt.s32.totalorder %v732_v45, 12  ;;  %vm1575_vm3 = vcmp.eq.s32.totalorder %v740_v46, 0  ;;  %vm750_vm4 = vmand %vm1554_vm14, %vm1558_vm15 }
 0x105   :  { %vm748_vm5 = vmand %vm1571_vm2, %vm1575_vm3 }
 0x106   :  { %1141 = vmatmul.mubr.msk.bf16.vlgmr.msra.gmra.mxu1 %vm452_vm7, %v615_v63 }
 0x107   :  { %1144 = vmatprep.mubr.msk.bf16.mxu1 %vm452_vm7, %v616_v2  ;;  %1155 = vmatpush3.bf16.msra.mxu1 %v1187_v8 }
 0x108   :  { %1156 = vmatprep.subr.bf16.mxu1 %v1217_v7 }
 0x10b   :  { %1157 = vmatpush3.bf16.msra.mxu1 %v1188_v10 }
 0x10c   :  { %1158 = vmatprep.subr.bf16.mxu1 %v1217_v7 }
 0x10e   :  { %1145 = vmatmul.mubr.msk.bf16.gmra.mxu1 %vm452_vm7, %v617_v5  ;;  %vm825_vm7 = vcmask 1041409  }
 0x10f   :  { %1170 = vmatprep.mubr.msk.bf16.mxu1 %vm1218_vm9, %v1217_v7  ;;  %1159 = vmatpush3.bf16.msra.mxu1 %v1189_v12 }
 0x110   :  { %1160 = vmatprep.subr.bf16.mxu1 %v1217_v7 }
 0x113   :  { %1161 = vmatpush3.bf16.msra.mxu1 %v1190_v13 }
 0x114   :  { %1162 = vmatprep.subr.bf16.mxu1 %v1217_v7 }
 0x117   :  { %1163 = vmatpush3.bf16.msra.mxu1 %v1191_v14 }
 0x118   :  { %1164 = vmatprep.subr.bf16.mxu1 %v1217_v7 }
 0x11b   :  { %1165 = vmatpush3.bf16.msra.mxu1 %v1192_v15 }
 0x11c   :  { %1166 = vmatprep.subr.bf16.mxu1 %v1217_v7 }
 0x1b3   :  { %v1122_v9 = vpop.f32.mrf.mxu1 }
 0x1b5   :  { %v503_v16 = vpop.f32.mrf.mxu1 }
 0x1b6   :  { %v1132_v17 = vpop.f32.mrf.mxu0 }
 0x1b7   :  { %v1123_v18 = vpop.f32.mrf.mxu1  ;;  %v592_v33 = vadd.f32 %v1132_v17, %v1122_v9 }
 0x1b8   :  { %v583_v19 = vpop.f32.mrf.mxu0 }
 0x1b9   :  { %v506_v21 = vpop.f32.mrf.mxu1  ;;  %v584_v39 = vadd.f32 %v583_v19, %v503_v16 }
 0x1ba   :  { %v1133_v22 = vpop.f32.mrf.mxu0 }
 0x1bb   :  { %v595_v47 = vadd.f32 %v1133_v22, %v1123_v18 }
 0x1bc   :  { %v586_v27 = vpop.f32.mrf.mxu0 }
 0x1bd   :  { %v587_v54 = vadd.f32 %v586_v27, %v506_v21 }
 0x1be   :  { %v1126_v23 = vpop.f32.mrf.mxu1 }
 0x1c0   :  { %v519_v25 = vpop.f32.mrf.mxu1 }
 0x1c1   :  { %v1136_v34 = vpop.f32.mrf.mxu0 }
 0x1c2   :  { %v1127_v28 = vpop.f32.mrf.mxu1  ;;  %v608_v61 = vadd.f32 %v1136_v34, %v1126_v23 }
 0x1c3   :  { %v599_v48 = vpop.f32.mrf.mxu0 }
 0x1c4   :  { %v1525_v30 = vpop.f32.mrf.mxu1  ;;  %v600_v3 = vadd.f32 %v599_v48, %v519_v25 }
 0x1c5   :  { %v1137_v62 = vpop.f32.mrf.mxu0 }
 0x1c6   :  { %v1142_v36 = vpop.f32.mrf.mxu1  ;;  %v611_v13 = vadd.f32 %v1137_v62, %v1127_v28 }
 0x1c7   :  { %v702_v40 = vadd.f32 %v1142_v36, %v592_v33  ;;  %v602_v23 = vpop.f32.mrf.mxu0 }
 0x1c8   :  { %v669_v43 = vpop.f32.mrf.mxu1  ;;  %v603_v36 = vadd.f32 %v602_v23, %v1525_v30 }
 0x1c9   :  { %v717_v26 = vadd.f32 %v1533_v1, %v702_v40  ;;  %v700_v49 = vadd.f32 %v669_v43, %v584_v39 }
 0x1ca   :  { %v1143_v51 = vpop.f32.mrf.mxu1 }
 0x1cb   :  { %v725_v55 = vmax.f32 %v717_v26, 0.0  ;;  %v715_v56 = vadd.f32 %v1533_v1, %v700_v49  ;;  %v703_v57 = vadd.f32 %v1143_v51, %v595_v47 }
 0x1cc   :  { %v672_v58 = vpop.f32.mrf.mxu1 }
 0x1cd   :  { %v723_v63 = vmax.f32 %v715_v56, 0.0  ;;  %v718_v0 = vadd.f32 %v1533_v1, %v703_v57  ;;  %v701_v2 = vadd.f32 %v672_v58, %v587_v54  ;;  %v753_v4 = vsel %vm749_vm0, %v725_v55, 0.0 }
 0x1ce   :  { %v1146_v5 = vpop.f32.mrf.mxu1  ;;  %v763_v18 = vrot.slane %v753_v4, 2 }
 0x1cf   :  { %v751_v6 = vsel %vm747_vm1, %v723_v63, 0.0  ;;  %v726_v8 = vmax.f32 %v718_v0, 0.0  ;;  %v716_v10 = vadd.f32 %v1533_v1, %v701_v2  ;;  %v706_v12 = vadd.f32 %v1146_v5, %v608_v61 }
 0x1d0   :  { %v685_v14 = vpop.f32.mrf.mxu1  ;;  %v759_v19 = vrot.slane %v751_v6, 2 }
 0x1d1   :  { %v754_v15 = vsel %vm750_vm4, %v726_v8, 0.0  ;;  %v724_v9 = vmax.f32 %v716_v10, 0.0  ;;  %v721_v16 = vadd.f32 %v1533_v1, %v706_v12  ;;  %v704_v17 = vadd.f32 %v685_v14, %v600_v3 }
 0x1d2   :  { %v765_v21 = vrot.slane %v754_v15, 2  ;;  %v1147_v22 = vpop.f32.mrf.mxu1 }
 0x1d3   :  { %v752_v24 = vsel %vm748_vm5, %v724_v9, 0.0  ;;  %v719_v25 = vadd.f32 %v1533_v1, %v704_v17  ;;  %v707_v27 = vadd.f32 %v1147_v22, %v611_v13  ;;  %v729_v31 = vmax.f32 %v721_v16, 0.0 }
 0x1d4   :  { %v767_v28 = vsel %vm432_vm8, %v763_v18, %v765_v21  ;;  %v773_v29 = vsel %vm432_vm8, %v765_v21, %v759_v19  ;;  %v761_v20 = vrot.slane %v752_v24, 2  ;;  %v688_v35 = vpop.f32.mrf.mxu1 }
 0x1d5   :  { %v777_v32 = vmax.f32 %v753_v4, %v767_v28  ;;  %v778_v33 = vmax.f32 %v754_v15, %v773_v29  ;;  %v727_v34 = vmax.f32 %v719_v25, 0.0  ;;  %v722_v39 = vadd.f32 %v1533_v1, %v707_v27 }
 0x1d6   :  { %v769_v37 = vsel %vm432_vm8, %v761_v20, %v763_v18  ;;  %v771_v38 = vsel %vm432_vm8, %v759_v19, %v761_v20  ;;  %v757_v45 = vsel %vm749_vm0, %v729_v31, 0.0  ;;  %v705_v47 = vadd.f32 %v688_v35, %v603_v36  ;;  %v1193_v31 = vld [vmem:[%s1682_s7 + $0x8] sm:$0xff]  }
 0x1d7   :  { %v775_v40 = vmax.f32 %v751_v6, %v771_v38  ;;  %v776_v43 = vmax.f32 %v752_v24, %v769_v37  ;;  %v755_v30 = vsel %vm747_vm1, %v727_v34, 0.0  ;;  %v730_v46 = vmax.f32 %v722_v39, 0.0  ;;  %1167 = vmatpush3.bf16.msra.mxu1 %v1193_v31 }
 0x1d8   :  { %v786_v48 = vsel %vm783_vm6, %v777_v32, -inf  ;;  %v788_v26 = vsel %vm783_vm6, %v778_v33, -inf  ;;  %v720_v50 = vadd.f32 %v1533_v1, %v705_v47  ;;  %v764_v54 = vrot.slane %v757_v45, 2  ;;  %1168 = vmatprep.subr.bf16.mxu1 %v1217_v7  ;;  %v1194_v32 = vld [vmem:[%s1682_s7] sm:$0xff]  }
 0x1d9   :  { %v784_v49 = vsel %vm783_vm6, %v775_v40, -inf  ;;  %v785_v41 = vsel %vm783_vm6, %v776_v43, -inf  ;;  %v758_v44 = vsel %vm750_vm4, %v730_v46, 0.0  ;;  %v760_v55 = vrot.slane %v755_v30, 2  ;;  %v1035_v33 = vld [vmem:[%s1681_s6] ss:$0 sm:$0xff] }
 0x1da   :  { %v787_v51 = vmax.f32 %v784_v49, %v786_v48  ;;  %v789_v42 = vmax.f32 %v785_v41, %v788_v26  ;;  %v766_v56 = vrot.slane %v758_v44, 2  ;;  %v728_v58 = vmax.f32 %v720_v50, 0.0  ;;  %v1038_v7 = vld [vmem:[%s1683_s8] ss:$0 sm:$0xff]  ;;  %s1195_s6 = scalar_lea.vmem %s998_s3, 32 }
 0x1db   :  { %1169 = vmatpush3.bf16.msra.mxu1 %v1194_v32  ;;  %p1196_p0 = scmp.ne.s32.totalorder %s998_s3, %s1195_s6  ;;  %p1201_p2 = scmp.lt.s32.totalorder %s1195_s6, %s1195_s6 }
 0x1dc   :  { %v790_v57 = vmax.f32 %v787_v51, %v789_v42  ;;  %v768_v61 = vsel %vm432_vm8, %v764_v54, %v766_v56  ;;  %v774_v62 = vsel %vm432_vm8, %v766_v56, %v760_v55  ;;  %v756_v52 = vsel %vm748_vm5, %v728_v58, 0.0 }
 0x1dd   :  { %v762_v53 = vrot.slane %v756_v52, 2  ;;  %v781_v0 = vmax.f32 %v757_v45, %v768_v61  ;;  %v782_v2 = vmax.f32 %v758_v44, %v774_v62  ;;  %p1202_p3 = por %p1201_p2, %p1200_p1 }
 0x1de   :  { %v791_v63 = vrot.slane %v790_v57, 4 }
 0x1df   :  { %v770_v3 = vsel %vm432_vm8, %v762_v53, %v764_v54  ;;  %v772_v4 = vsel %vm432_vm8, %v760_v55, %v762_v53  ;;  %v799_v10 = vsel %vm783_vm6, %v781_v0, -inf  ;;  %v801_v59 = vsel %vm783_vm6, %v782_v2, -inf  ;;  %p1203_p4 = pnand %p1202_p3, %p1196_p0 }
 0x1e0   :  { %v792_v1 = vmax.f32 %v790_v57, %v791_v63  ;;  %v779_v5 = vmax.f32 %v755_v30, %v772_v4  ;;  %v780_v6 = vmax.f32 %v756_v52, %v770_v3 }
 0x1e2   :  { %v793_v8 = vrot.slane %v792_v1, 2  ;;  %v797_v60 = vsel %vm783_vm6, %v779_v5, -inf  ;;  %v798_v12 = vsel %vm783_vm6, %v780_v6, -inf }
 0x1e3   :  { %v800_v13 = vmax.f32 %v797_v60, %v799_v10  ;;  %v802_v14 = vmax.f32 %v798_v12, %v801_v59 }
 0x1e4   :  { %v794_v15 = vmax.f32 %v792_v1, %v793_v8 }
 0x1e5   :  { %v803_v9 = vmax.f32 %v800_v13, %v802_v14 }
 0x1e6   :  { %v795_v17 = vrot.slane %v794_v15, 1 }
 0x1e7   :  { %v804_v16 = vrot.slane %v803_v9, 4 }
 0x1e8   :  { %v796_v19 = vmax.f32 %v794_v15, %v795_v17 }
 0x1e9   :  { %v805_v18 = vmax.f32 %v803_v9, %v804_v16 }
 0x1ea   :  { %v810_v23 = vpack.c.bf16 %v796_v19, %v796_v19 }
 0x1eb   :  { %v806_v11 = vrot.slane %v805_v18, 2 }
 0x1ec   :  { %v823_v27 = vunpack.c.l.b16 %v810_v23 }
 0x1ed   :  { %v807_v21 = vmax.f32 %v805_v18, %v806_v11 }
 0x1ef   :  { %v808_v22 = vrot.slane %v807_v21, 1 }
 0x1f1   :  { %v809_v24 = vmax.f32 %v807_v21, %v808_v22 }
 0x1f3   :  { %v811_v25 = vpack.c.bf16 %v809_v24, %v809_v24 }
 0x1f5   :  { %v824_v28 = vunpack.c.l.b16 %v811_v25 }
 0x1f7   :  { %v826_v29 = vsel %vm825_vm7, %v824_v28, %v823_v27 }
 0x1f8   :  { %v827_v20 = vpack.c.b16 %v826_v29, %v826_v29 }
 0x1fa   :  { %1151 = vmatmul.mubr.msk.bf16.vlgmr.msra.gmra.mxu0 %vm783_vm6, %v827_v20 }
 0x2ba   :  { %v871_v34 = vpop.f32.mrf.mxu0 }
 0x2bb   :  { %v872_v35 = vadd.f32 %v1035_v33, %v871_v34 }
 0x2bc   :  { %v1152_v36 = vpop.f32.mrf.mxu0 }
 0x2bd   :  { %v877_v37 = vmax.f32 %v872_v35, 0.0 }
 0x2be   :  { %v874_v38 = vpop.f32.mrf.mxu0 }
 0x2bf   :  { %v878_v39 = vpack.c.bf16 %v877_v37, %v877_v37 }
 0x2c0   :  { %v1153_v40 = vpop.f32.mrf.mxu0 }
 0x2c1   :  { %1171 = vmatmul.mubr.bf16.vlgmr.msra.gmra.mxu1 %v878_v39 }
 0x381   :  { %v984_v43 = vpop.f32.mrf.mxu1 }
 0x382   :  { %v985_v45 = vadd.f32 %v1038_v7, %v984_v43 }
 0x383   :  { %v1172_v30 = vpop.f32.mrf.mxu1 }
 0x384   :  { %990 = vst [vmem:[#allocation2] sm:$0x3] %v985_v45 }
 0x385   :  { %v987_v46 = vpop.f32.mrf.mxu1 }
 0x386   :  { %1206 = shalt.err (!%p1203_p4)
}
 0x387   :  { %1000 = dma.vmem_to_hbm [thread:$0]  %s998_s3, 32, %s1684_s9, [#allocation3]   ;;  %v1173_v47 = vpop.f32.mrf.mxu1 }
 0x388   :  { %1215 = dma.done.wait [#allocation3], 32  }
 0x389   :  { %1216 = vsyncadd [#allocation3], 4294967264 }
 0x38a   :  { %1004 = vsyncpa [#allocation3], 1 }

</bundles_post_ra>
